<compile_context>
chip_gen: v5e
topology: v5e:2x2
jax: 0.10.0
libtpu: 0.0.40
codegen_flags: <defaults>
</compile_context>

<pallas_src>
import numpy as np

import jax
import jax.numpy as jnp
from jax.experimental import pallas as pl
from jax.experimental.pallas import tpu as pltpu  # noqa: F401  (kept for TODO path)


CIN_PAD = 8      # stem input channels padded 4 -> 8  => stem slab is 128 lanes
OUT_LANES = 128  # output channels padded to a full lane-dense vreg width


# ---------------------------------------------------------------------------
# Fused Pallas kernel: conv1+bn+relu -> maxpool 2x2 -> (conv+bn+relu, conv+bn,
# +identity, relu) -> global avg pool.  Single invocation, whole batch.
# ---------------------------------------------------------------------------

def _restnest_fused_kernel(x_ref, wb1_ref, b1_ref, shs_ref, rsel_ref,
                           wb2_ref, b2_ref, wb3_ref, b3_ref, shb_ref,
                           rowsum_ref, gpool_ref, o_ref):
    f32 = jnp.float32
    bf16 = jnp.bfloat16

    def band_conv3x3(z_bf, wb_ref, shift_ref):
        # shift_ref[0] @ z -> row h-1 (zero at each image's top row),
        # shift_ref[1] @ z -> row h+1 (zero at each image's bottom row).
        # Shifts are exact 0/1 matrices, so the bf16 round-trip is exact.
        zm = jnp.dot(shift_ref[0], z_bf, preferred_element_type=f32).astype(bf16)
        zp = jnp.dot(shift_ref[1], z_bf, preferred_element_type=f32).astype(bf16)
        acc = jnp.dot(zm, wb_ref[0], preferred_element_type=f32)
        acc = acc + jnp.dot(z_bf, wb_ref[1], preferred_element_type=f32)
        acc = acc + jnp.dot(zp, wb_ref[2], preferred_element_type=f32)
        return acc

    # ---- stem: conv1 (3x3, pad 1) + folded BN + ReLU -----------------------
    x = x_ref[...]                                           # (N*H, W*CIN_PAD) bf16
    y1 = jnp.maximum(band_conv3x3(x, wb1_ref, shs_ref) + b1_ref[...], 0.0)
    y1_bf = y1.astype(bf16)                                  # (N*H, 2*Wp*Cs)

    # ---- 2x2 maxpool, stride 2 ---------------------------------------------
    # Rows: tiny block-diagonal 0/1 selection matmuls (per-image, no leakage).
    rmax = jnp.maximum(
        jnp.dot(rsel_ref[0], y1_bf, preferred_element_type=f32),
        jnp.dot(rsel_ref[1], y1_bf, preferred_element_type=f32))   # (N*Hp, 256)
    # Columns: stem band weights already split columns by parity into the two
    # aligned 128-lane halves (each in compacted wp*C+c order), so the column
    # pair-max needs no selector matrices at all.
    half = rmax.shape[1] // 2
    pooled = jnp.maximum(rmax[:, :half], rmax[:, half:])     # (N*Hp, Wp*Cs) f32
    pooled_bf = pooled.astype(bf16)

    # ---- residual basic block ----------------------------------------------
    y2 = jnp.maximum(band_conv3x3(pooled_bf, wb2_ref, shb_ref) + b2_ref[...], 0.0)
    y3 = jnp.maximum(band_conv3x3(y2.astype(bf16), wb3_ref, shb_ref)
                     + b3_ref[...] + pooled, 0.0)            # (N*Hp, Wp*Cb) f32

    # ---- per-image global average pool -> lane-dense (N, 128) --------------
    s = jnp.dot(rowsum_ref[...], y3.astype(bf16), preferred_element_type=f32)
    o_ref[...] = jnp.dot(s.astype(bf16), gpool_ref[...],
                         preferred_element_type=f32)


# ---------------------------------------------------------------------------
# Host-side, one-time parameter folding (analogous to loading the checkpoint)
# ---------------------------------------------------------------------------

def _band_weights(w_oihw, scale, w_in, cin_pad, n_out_lanes, out_lane):
    """3x3/stride-1/pad-1 conv as 3 row-tap band matrices acting on a
    (rows, w_in*cin_pad) slab: out = sum_di row_shift_di(x) @ band[di].
    W padding is folded in (out-of-range taps contribute zero); out_lane(wo,co)
    chooses the output lane layout (used to pre-split columns by parity)."""
    w = np.asarray(w_oihw, np.float32)
    cout, cin, kh, kw = w.shape
    w = w * np.asarray(scale, np.float32)[:, None, None, None]     # fold BN
    w = w.transpose(2, 3, 1, 0)                                    # (kh,kw,Ci,Co)
    band = np.zeros((kh, w_in * cin_pad, n_out_lanes), np.float32)
    for dj in range(kw):
        for wo in range(w_in):
            wi = wo + dj - 1
            if not 0 <= wi < w_in:
                continue
            for co in range(cout):
                band[:, wi * cin_pad:wi * cin_pad + cin,
                     out_lane(wo, co)] = w[:, dj, :, co]
    return band


def _block_diag_shifts(n_images, rows):
    """Block-diagonal row-shift matrices: [0] -> row h-1 (zero at image top),
    [1] -> row h+1 (zero at image bottom).  Never mixes images."""
    sh = np.zeros((2, n_images * rows, n_images * rows), np.float32)
    for n in range(n_images):
        s = slice(n * rows, (n + 1) * rows)
        sh[0, s, s] = np.eye(rows, k=-1)
        sh[1, s, s] = np.eye(rows, k=1)
    return sh


def prepare_params(params, *, N, H, W, eps=1e-5):
    assert H % 2 == 0 and W % 2 == 0, "maxpool 2x2 assumes even H, W"

    def fold(g, b, m, v):
        g, b = np.asarray(g, np.float32), np.asarray(b, np.float32)
        m, v = np.asarray(m, np.float32), np.asarray(v, np.float32)
        s = g / np.sqrt(v + eps)
        return s, b - m * s

    s1, bi1 = fold(params["g1"], params["be1"], params["m1"], params["v1"])
    s2, bi2 = fold(params["g2"], params["be2"], params["m2"], params["v2"])
    s3, bi3 = fold(params["g3"], params["be3"], params["m3"], params["v3"])

    c_stem = int(params["w1"].shape[0])
    c_blk = int(params["w2"].shape[0])
    Hp, Wp = H // 2, W // 2
    stem_half = Wp * c_stem                  # 128 lanes per column-parity half

    # Stem band: even-w output columns -> lanes [0, stem_half), odd-w columns
    # -> lanes [stem_half, 2*stem_half), each in compacted (wp*C + c) order.
    stem_lane = lambda wo, co: (wo % 2) * stem_half + (wo // 2) * c_stem + co
    wb1 = _band_weights(params["w1"], s1, W, CIN_PAD, 2 * stem_half, stem_lane)

    blk_lane = lambda wo, co: wo * c_blk + co
    wb2 = _band_weights(params["w2"], s2, Wp, c_stem, Wp * c_blk, blk_lane)
    wb3 = _band_weights(params["w3"], s3, Wp, c_blk, Wp * c_blk, blk_lane)

    # Row 2x2-pool selectors, block-diagonal over the batch.
    rsel = np.zeros((2, N * Hp, N * H), np.float32)
    for n in range(N):
        rsel[0, n * Hp + np.arange(Hp), n * H + 2 * np.arange(Hp)] = 1.0
        rsel[1, n * Hp + np.arange(Hp), n * H + 2 * np.arange(Hp) + 1] = 1.0

    shift_stem = _block_diag_shifts(N, H)
    shift_blk = _block_diag_shifts(N, Hp)

    # Per-image global average pool: rowsum sums each image's rows, gpool sums
    # the Wp column groups into the first c_blk of 128 output lanes, scaled by
    # 1/(Hp*Wp) (exactly representable in bf16 for power-of-two sizes).
    rowsum = np.zeros((N, N * Hp), np.float32)
    for n in range(N):
        rowsum[n, n * Hp:(n + 1) * Hp] = 1.0
    gpool = np.zeros((Wp * c_blk, OUT_LANES), np.float32)
    for w in range(Wp):
        gpool[w * c_blk + np.arange(c_blk), np.arange(c_blk)] = 1.0 / (Hp * Wp)

    # Biases depend only on the channel, so tiling over lane groups is layout
    # independent (every 16-lane group is a full channel set).
    b1 = np.tile(bi1, W).reshape(1, W * c_stem)
    b2 = np.tile(bi2, Wp).reshape(1, Wp * c_blk)
    b3 = np.tile(bi3, Wp).reshape(1, Wp * c_blk)

    jb = lambda a: jnp.asarray(a, jnp.bfloat16)   # MXU operands (bf16 exact 0/1)
    jf = lambda a: jnp.asarray(a, jnp.float32)    # bias adds stay f32 (VPU)
    return dict(wb1=jb(wb1), wb2=jb(wb2), wb3=jb(wb3),
                rsel=jb(rsel), shift_stem=jb(shift_stem),
                shift_blk=jb(shift_blk), rowsum=jb(rowsum), gpool=jb(gpool),
                b1=jf(b1), b2=jf(b2), b3=jf(b3))


# ---------------------------------------------------------------------------
# Forward pass wrapper (single pallas_call, no grid: whole batch in one step)
# ---------------------------------------------------------------------------

def restnest_fex_forward(x_nchw, prep):
    N, Cin, H, W = x_nchw.shape
    c_out = prep["b3"].shape[1] // (W // 2)

    # NCHW -> NHWC, zero-pad channels to CIN_PAD, stack the batch along rows
    # (image n occupies rows n*H .. n*H+H-1), cast activations to bf16.
    x = jnp.transpose(x_nchw, (0, 2, 3, 1)).astype(jnp.float32)
    x = jnp.pad(x, ((0, 0), (0, 0), (0, 0), (0, CIN_PAD - Cin)))
    x = x.reshape(N * H, W * CIN_PAD).astype(jnp.bfloat16)

    args = (x, prep["wb1"], prep["b1"], prep["shift_stem"], prep["rsel"],
            prep["wb2"], prep["b2"], prep["wb3"], prep["b3"],
            prep["shift_blk"], prep["rowsum"], prep["gpool"])

    bytes_accessed = sum(int(np.prod(a.shape)) * a.dtype.itemsize for a in args)
    bytes_accessed += N * OUT_LANES * 4
    cost = pl.CostEstimate(flops=9_300_000, transcendentals=0,
                           bytes_accessed=bytes_accessed)

    out = pl.pallas_call(
        _restnest_fused_kernel,
        out_shape=jax.ShapeDtypeStruct((N, OUT_LANES), jnp.float32),
        cost_estimate=cost,
    )(*args)

    # First c_out lanes hold the real channels; PyTorch output is (N, C, 1, 1).
    return out[:, :c_out][:, :, None, None]


# ---------------------------------------------------------------------------
# Pure-JAX f32 reference (same math, no Pallas) used as a correctness check
# ---------------------------------------------------------------------------

def _ref_forward(x_nchw, params, eps=1e-5):
    hi = jax.lax.Precision.HIGHEST

    def conv_bn(x, w, g, b, m, v, relu, res=None):
        s = g / jnp.sqrt(v + eps)
        bi = b - m * s
        Nn, Hh, Ww, _ = x.shape
        wt = jnp.transpose(w, (2, 3, 1, 0))
        xp = jnp.pad(x, ((0, 0), (1, 1), (1, 1), (0, 0)))
        y = jnp.zeros((Nn, Hh, Ww, w.shape[0]), jnp.float32)
        for di in range(3):
            for dj in range(3):
                y = y + jnp.tensordot(xp[:, di:di + Hh, dj:dj + Ww, :],
                                      wt[di, dj], axes=[[3], [0]], precision=hi)
        y = y * s + bi
        if res is not None:
            y = y + res
        return jnp.maximum(y, 0.0) if relu else y

    x = jnp.transpose(x_nchw, (0, 2, 3, 1)).astype(jnp.float32)
    x = conv_bn(x, params["w1"], params["g1"], params["be1"],
                params["m1"], params["v1"], True)
    N, H, W, C = x.shape
    x = x.reshape(N, H // 2, 2, W // 2, 2, C).max(axis=(2, 4))
    ident = x
    y = conv_bn(x, params["w2"], params["g2"], params["be2"],
                params["m2"], params["v2"], True)
    y = conv_bn(y, params["w3"], params["g3"], params["be3"],
                params["m3"], params["v3"], True, res=ident)
    return y.mean(axis=(1, 2))[:, :, None, None]


# ---------------------------------------------------------------------------
# Main
# ---------------------------------------------------------------------------

if __name__ == "__main__":
    key = jax.random.PRNGKey(0)
    ks = jax.random.split(key, 12)

    # input: batch=2, channels=4, spatial=16x16 (NCHW, PyTorch convention)
    x = jax.random.normal(ks[0], (2, 4, 16, 16), dtype=jnp.float32)

    c_stem = c_blk = 16
    params = dict(
        w1=0.1 * jax.random.normal(ks[1], (c_stem, 4, 3, 3), jnp.float32),
        g1=1.0 + 0.05 * jax.random.normal(ks[2], (c_stem,), jnp.float32),
        be1=0.05 * jax.random.normal(ks[3], (c_stem,), jnp.float32),
        m1=jnp.zeros((c_stem,), jnp.float32),
        v1=jnp.ones((c_stem,), jnp.float32),
        w2=0.1 * jax.random.normal(ks[4], (c_blk, c_stem, 3, 3), jnp.float32),
        g2=1.0 + 0.05 * jax.random.normal(ks[5], (c_blk,), jnp.float32),
        be2=0.05 * jax.random.normal(ks[6], (c_blk,), jnp.float32),
        m2=jnp.zeros((c_blk,), jnp.float32),
        v2=jnp.ones((c_blk,), jnp.float32),
        w3=0.1 * jax.random.normal(ks[7], (c_blk, c_blk, 3, 3), jnp.float32),
        g3=1.0 + 0.05 * jax.random.normal(ks[8], (c_blk,), jnp.float32),
        be3=0.05 * jax.random.normal(ks[9], (c_blk,), jnp.float32),
        m3=jnp.zeros((c_blk,), jnp.float32),
        v3=jnp.ones((c_blk,), jnp.float32),
    )

    prep = prepare_params(params, N=2, H=16, W=16)

    fwd = jax.jit(restnest_fex_forward)
    out = jax.block_until_ready(fwd(x, prep))

    assert out.shape == (2, 16, 1, 1), out.shape
    assert bool(jnp.all(jnp.isfinite(out)))

    # bf16 matmul operands (f32 accumulation) drift slightly from the pure-f32
    # reference; tolerance sized accordingly.
    ref = _ref_forward(x, params)
    err = float(jnp.max(jnp.abs(out - ref)))
    assert bool(jnp.allclose(out, ref, atol=5e-2, rtol=5e-2)), err

    print("KERNEL_OK")
</pallas_src>

<mosaic_0001>
module attributes {stable_mosaic.version = 11 : i64} {
  func.func @_restnest_fused_kernel(%arg0: memref<32x128xbf16, #tpu.memory_space<vmem>>, %arg1: memref<3x128x256xbf16, #tpu.memory_space<vmem>>, %arg2: memref<1x256xf32, #tpu.memory_space<vmem>>, %arg3: memref<2x32x32xbf16, #tpu.memory_space<vmem>>, %arg4: memref<2x16x32xbf16, #tpu.memory_space<vmem>>, %arg5: memref<3x128x128xbf16, #tpu.memory_space<vmem>>, %arg6: memref<1x128xf32, #tpu.memory_space<vmem>>, %arg7: memref<3x128x128xbf16, #tpu.memory_space<vmem>>, %arg8: memref<1x128xf32, #tpu.memory_space<vmem>>, %arg9: memref<2x16x16xbf16, #tpu.memory_space<vmem>>, %arg10: memref<2x16xbf16, #tpu.memory_space<vmem>>, %arg11: memref<128x128xbf16, #tpu.memory_space<vmem>>, %arg12: memref<2x128xf32, #tpu.memory_space<vmem>>) attributes {dimension_semantics = [], scalar_prefetch = 0 : i64, scratch_operands = 0 : i64, tpu.core_type = #tpu.core_type<tc>} {
    %c0 = arith.constant 0 : index
    %c0_0 = arith.constant 0 : index
    %0 = vector.load %arg0[%c0, %c0_0] : memref<32x128xbf16, #tpu.memory_space<vmem>>, vector<32x128xbf16>
    %c0_1 = arith.constant 0 : index
    %c0_2 = arith.constant 0 : index
    %c0_3 = arith.constant 0 : index
    %1 = vector.load %arg3[%c0_1, %c0_2, %c0_3] : memref<2x32x32xbf16, #tpu.memory_space<vmem>>, vector<1x32x32xbf16>
    %2 = vector.shape_cast %1 : vector<1x32x32xbf16> to vector<32x32xbf16>
    %cst = arith.constant dense<0.000000e+00> : vector<32x128xf32>
    %3 = tpu.matmul %2, %0, %cst {dimension_numbers = #tpu.dot_dimension_numbers<[1], [0], [0], [1], [0, 0, 1, 1], [], []>} : vector<32x32xbf16>, vector<32x128xbf16>, vector<32x128xf32> -> vector<32x128xf32>
    %4 = arith.truncf %3 : vector<32x128xf32> to vector<32x128xbf16>
    %c1 = arith.constant 1 : index
    %c0_4 = arith.constant 0 : index
    %c0_5 = arith.constant 0 : index
    %5 = vector.load %arg3[%c1, %c0_4, %c0_5] : memref<2x32x32xbf16, #tpu.memory_space<vmem>>, vector<1x32x32xbf16>
    %6 = vector.shape_cast %5 : vector<1x32x32xbf16> to vector<32x32xbf16>
    %cst_6 = arith.constant dense<0.000000e+00> : vector<32x128xf32>
    %7 = tpu.matmul %6, %0, %cst_6 {dimension_numbers = #tpu.dot_dimension_numbers<[1], [0], [0], [1], [0, 0, 1, 1], [], []>} : vector<32x32xbf16>, vector<32x128xbf16>, vector<32x128xf32> -> vector<32x128xf32>
    %8 = arith.truncf %7 : vector<32x128xf32> to vector<32x128xbf16>
    %c0_7 = arith.constant 0 : index
    %c0_8 = arith.constant 0 : index
    %c0_9 = arith.constant 0 : index
    %9 = vector.load %arg1[%c0_7, %c0_8, %c0_9] : memref<3x128x256xbf16, #tpu.memory_space<vmem>>, vector<1x128x256xbf16>
    %10 = vector.shape_cast %9 : vector<1x128x256xbf16> to vector<128x256xbf16>
    %cst_10 = arith.constant dense<0.000000e+00> : vector<32x256xf32>
    %11 = tpu.matmul %4, %10, %cst_10 {dimension_numbers = #tpu.dot_dimension_numbers<[1], [0], [0], [1], [0, 0, 1, 1], [], []>} : vector<32x128xbf16>, vector<128x256xbf16>, vector<32x256xf32> -> vector<32x256xf32>
    %c1_11 = arith.constant 1 : index
    %c0_12 = arith.constant 0 : index
    %c0_13 = arith.constant 0 : index
    %12 = vector.load %arg1[%c1_11, %c0_12, %c0_13] : memref<3x128x256xbf16, #tpu.memory_space<vmem>>, vector<1x128x256xbf16>
    %13 = vector.shape_cast %12 : vector<1x128x256xbf16> to vector<128x256xbf16>
    %cst_14 = arith.constant dense<0.000000e+00> : vector<32x256xf32>
    %14 = tpu.matmul %0, %13, %cst_14 {dimension_numbers = #tpu.dot_dimension_numbers<[1], [0], [0], [1], [0, 0, 1, 1], [], []>} : vector<32x128xbf16>, vector<128x256xbf16>, vector<32x256xf32> -> vector<32x256xf32>
    %15 = arith.addf %11, %14 : vector<32x256xf32>
    %c2 = arith.constant 2 : index
    %c0_15 = arith.constant 0 : index
    %c0_16 = arith.constant 0 : index
    %16 = vector.load %arg1[%c2, %c0_15, %c0_16] : memref<3x128x256xbf16, #tpu.memory_space<vmem>>, vector<1x128x256xbf16>
    %17 = vector.shape_cast %16 : vector<1x128x256xbf16> to vector<128x256xbf16>
    %cst_17 = arith.constant dense<0.000000e+00> : vector<32x256xf32>
    %18 = tpu.matmul %8, %17, %cst_17 {dimension_numbers = #tpu.dot_dimension_numbers<[1], [0], [0], [1], [0, 0, 1, 1], [], []>} : vector<32x128xbf16>, vector<128x256xbf16>, vector<32x256xf32> -> vector<32x256xf32>
    %19 = arith.addf %15, %18 : vector<32x256xf32>
    %c0_18 = arith.constant 0 : index
    %c0_19 = arith.constant 0 : index
    %20 = vector.load %arg2[%c0_18, %c0_19] : memref<1x256xf32, #tpu.memory_space<vmem>>, vector<1x256xf32>
    %21 = vector.broadcast %20 : vector<1x256xf32> to vector<32x256xf32>
    %22 = arith.addf %19, %21 : vector<32x256xf32>
    %cst_20 = arith.constant 0.000000e+00 : f32
    %23 = vector.broadcast %cst_20 : f32 to vector<32x256xf32>
    %24 = arith.maximumf %22, %23 : vector<32x256xf32>
    %25 = arith.truncf %24 : vector<32x256xf32> to vector<32x256xbf16>
    %c0_21 = arith.constant 0 : index
    %c0_22 = arith.constant 0 : index
    %c0_23 = arith.constant 0 : index
    %26 = vector.load %arg4[%c0_21, %c0_22, %c0_23] : memref<2x16x32xbf16, #tpu.memory_space<vmem>>, vector<1x16x32xbf16>
    %27 = vector.shape_cast %26 : vector<1x16x32xbf16> to vector<16x32xbf16>
    %cst_24 = arith.constant dense<0.000000e+00> : vector<16x256xf32>
    %28 = tpu.matmul %27, %25, %cst_24 {dimension_numbers = #tpu.dot_dimension_numbers<[1], [0], [0], [1], [0, 0, 1, 1], [], []>} : vector<16x32xbf16>, vector<32x256xbf16>, vector<16x256xf32> -> vector<16x256xf32>
    %c1_25 = arith.constant 1 : index
    %c0_26 = arith.constant 0 : index
    %c0_27 = arith.constant 0 : index
    %29 = vector.load %arg4[%c1_25, %c0_26, %c0_27] : memref<2x16x32xbf16, #tpu.memory_space<vmem>>, vector<1x16x32xbf16>
    %30 = vector.shape_cast %29 : vector<1x16x32xbf16> to vector<16x32xbf16>
    %cst_28 = arith.constant dense<0.000000e+00> : vector<16x256xf32>
    %31 = tpu.matmul %30, %25, %cst_28 {dimension_numbers = #tpu.dot_dimension_numbers<[1], [0], [0], [1], [0, 0, 1, 1], [], []>} : vector<16x32xbf16>, vector<32x256xbf16>, vector<16x256xf32> -> vector<16x256xf32>
    %32 = arith.maximumf %28, %31 : vector<16x256xf32>
    %33 = vector.extract_strided_slice %32 {offsets = [0, 0], sizes = [16, 128], strides = [1, 1]} : vector<16x256xf32> to vector<16x128xf32>
    %34 = vector.extract_strided_slice %32 {offsets = [0, 128], sizes = [16, 128], strides = [1, 1]} : vector<16x256xf32> to vector<16x128xf32>
    %35 = arith.maximumf %33, %34 : vector<16x128xf32>
    %36 = arith.truncf %35 : vector<16x128xf32> to vector<16x128xbf16>
    %c0_29 = arith.constant 0 : index
    %c0_30 = arith.constant 0 : index
    %c0_31 = arith.constant 0 : index
    %37 = vector.load %arg9[%c0_29, %c0_30, %c0_31] : memref<2x16x16xbf16, #tpu.memory_space<vmem>>, vector<1x16x16xbf16>
    %38 = vector.shape_cast %37 : vector<1x16x16xbf16> to vector<16x16xbf16>
    %cst_32 = arith.constant dense<0.000000e+00> : vector<16x128xf32>
    %39 = tpu.matmul %38, %36, %cst_32 {dimension_numbers = #tpu.dot_dimension_numbers<[1], [0], [0], [1], [0, 0, 1, 1], [], []>} : vector<16x16xbf16>, vector<16x128xbf16>, vector<16x128xf32> -> vector<16x128xf32>
    %40 = arith.truncf %39 : vector<16x128xf32> to vector<16x128xbf16>
    %c1_33 = arith.constant 1 : index
    %c0_34 = arith.constant 0 : index
    %c0_35 = arith.constant 0 : index
    %41 = vector.load %arg9[%c1_33, %c0_34, %c0_35] : memref<2x16x16xbf16, #tpu.memory_space<vmem>>, vector<1x16x16xbf16>
    %42 = vector.shape_cast %41 : vector<1x16x16xbf16> to vector<16x16xbf16>
    %cst_36 = arith.constant dense<0.000000e+00> : vector<16x128xf32>
    %43 = tpu.matmul %42, %36, %cst_36 {dimension_numbers = #tpu.dot_dimension_numbers<[1], [0], [0], [1], [0, 0, 1, 1], [], []>} : vector<16x16xbf16>, vector<16x128xbf16>, vector<16x128xf32> -> vector<16x128xf32>
    %44 = arith.truncf %43 : vector<16x128xf32> to vector<16x128xbf16>
    %c0_37 = arith.constant 0 : index
    %c0_38 = arith.constant 0 : index
    %c0_39 = arith.constant 0 : index
    %45 = vector.load %arg5[%c0_37, %c0_38, %c0_39] : memref<3x128x128xbf16, #tpu.memory_space<vmem>>, vector<1x128x128xbf16>
    %46 = vector.shape_cast %45 : vector<1x128x128xbf16> to vector<128x128xbf16>
    %cst_40 = arith.constant dense<0.000000e+00> : vector<16x128xf32>
    %47 = tpu.matmul %40, %46, %cst_40 {dimension_numbers = #tpu.dot_dimension_numbers<[1], [0], [0], [1], [0, 0, 1, 1], [], []>} : vector<16x128xbf16>, vector<128x128xbf16>, vector<16x128xf32> -> vector<16x128xf32>
    %c1_41 = arith.constant 1 : index
    %c0_42 = arith.constant 0 : index
    %c0_43 = arith.constant 0 : index
    %48 = vector.load %arg5[%c1_41, %c0_42, %c0_43] : memref<3x128x128xbf16, #tpu.memory_space<vmem>>, vector<1x128x128xbf16>
    %49 = vector.shape_cast %48 : vector<1x128x128xbf16> to vector<128x128xbf16>
    %cst_44 = arith.constant dense<0.000000e+00> : vector<16x128xf32>
    %50 = tpu.matmul %36, %49, %cst_44 {dimension_numbers = #tpu.dot_dimension_numbers<[1], [0], [0], [1], [0, 0, 1, 1], [], []>} : vector<16x128xbf16>, vector<128x128xbf16>, vector<16x128xf32> -> vector<16x128xf32>
    %51 = arith.addf %47, %50 : vector<16x128xf32>
    %c2_45 = arith.constant 2 : index
    %c0_46 = arith.constant 0 : index
    %c0_47 = arith.constant 0 : index
    %52 = vector.load %arg5[%c2_45, %c0_46, %c0_47] : memref<3x128x128xbf16, #tpu.memory_space<vmem>>, vector<1x128x128xbf16>
    %53 = vector.shape_cast %52 : vector<1x128x128xbf16> to vector<128x128xbf16>
    %cst_48 = arith.constant dense<0.000000e+00> : vector<16x128xf32>
    %54 = tpu.matmul %44, %53, %cst_48 {dimension_numbers = #tpu.dot_dimension_numbers<[1], [0], [0], [1], [0, 0, 1, 1], [], []>} : vector<16x128xbf16>, vector<128x128xbf16>, vector<16x128xf32> -> vector<16x128xf32>
    %55 = arith.addf %51, %54 : vector<16x128xf32>
    %c0_49 = arith.constant 0 : index
    %c0_50 = arith.constant 0 : index
    %56 = vector.load %arg6[%c0_49, %c0_50] : memref<1x128xf32, #tpu.memory_space<vmem>>, vector<1x128xf32>
    %57 = vector.broadcast %56 : vector<1x128xf32> to vector<16x128xf32>
    %58 = arith.addf %55, %57 : vector<16x128xf32>
    %cst_51 = arith.constant 0.000000e+00 : f32
    %59 = vector.broadcast %cst_51 : f32 to vector<16x128xf32>
    %60 = arith.maximumf %58, %59 : vector<16x128xf32>
    %61 = arith.truncf %60 : vector<16x128xf32> to vector<16x128xbf16>
    %c0_52 = arith.constant 0 : index
    %c0_53 = arith.constant 0 : index
    %c0_54 = arith.constant 0 : index
    %62 = vector.load %arg9[%c0_52, %c0_53, %c0_54] : memref<2x16x16xbf16, #tpu.memory_space<vmem>>, vector<1x16x16xbf16>
    %63 = vector.shape_cast %62 : vector<1x16x16xbf16> to vector<16x16xbf16>
    %cst_55 = arith.constant dense<0.000000e+00> : vector<16x128xf32>
    %64 = tpu.matmul %63, %61, %cst_55 {dimension_numbers = #tpu.dot_dimension_numbers<[1], [0], [0], [1], [0, 0, 1, 1], [], []>} : vector<16x16xbf16>, vector<16x128xbf16>, vector<16x128xf32> -> vector<16x128xf32>
    %65 = arith.truncf %64 : vector<16x128xf32> to vector<16x128xbf16>
    %c1_56 = arith.constant 1 : index
    %c0_57 = arith.constant 0 : index
    %c0_58 = arith.constant 0 : index
    %66 = vector.load %arg9[%c1_56, %c0_57, %c0_58] : memref<2x16x16xbf16, #tpu.memory_space<vmem>>, vector<1x16x16xbf16>
    %67 = vector.shape_cast %66 : vector<1x16x16xbf16> to vector<16x16xbf16>
    %cst_59 = arith.constant dense<0.000000e+00> : vector<16x128xf32>
    %68 = tpu.matmul %67, %61, %cst_59 {dimension_numbers = #tpu.dot_dimension_numbers<[1], [0], [0], [1], [0, 0, 1, 1], [], []>} : vector<16x16xbf16>, vector<16x128xbf16>, vector<16x128xf32> -> vector<16x128xf32>
    %69 = arith.truncf %68 : vector<16x128xf32> to vector<16x128xbf16>
    %c0_60 = arith.constant 0 : index
    %c0_61 = arith.constant 0 : index
    %c0_62 = arith.constant 0 : index
    %70 = vector.load %arg7[%c0_60, %c0_61, %c0_62] : memref<3x128x128xbf16, #tpu.memory_space<vmem>>, vector<1x128x128xbf16>
    %71 = vector.shape_cast %70 : vector<1x128x128xbf16> to vector<128x128xbf16>
    %cst_63 = arith.constant dense<0.000000e+00> : vector<16x128xf32>
    %72 = tpu.matmul %65, %71, %cst_63 {dimension_numbers = #tpu.dot_dimension_numbers<[1], [0], [0], [1], [0, 0, 1, 1], [], []>} : vector<16x128xbf16>, vector<128x128xbf16>, vector<16x128xf32> -> vector<16x128xf32>
    %c1_64 = arith.constant 1 : index
    %c0_65 = arith.constant 0 : index
    %c0_66 = arith.constant 0 : index
    %73 = vector.load %arg7[%c1_64, %c0_65, %c0_66] : memref<3x128x128xbf16, #tpu.memory_space<vmem>>, vector<1x128x128xbf16>
    %74 = vector.shape_cast %73 : vector<1x128x128xbf16> to vector<128x128xbf16>
    %cst_67 = arith.constant dense<0.000000e+00> : vector<16x128xf32>
    %75 = tpu.matmul %61, %74, %cst_67 {dimension_numbers = #tpu.dot_dimension_numbers<[1], [0], [0], [1], [0, 0, 1, 1], [], []>} : vector<16x128xbf16>, vector<128x128xbf16>, vector<16x128xf32> -> vector<16x128xf32>
    %76 = arith.addf %72, %75 : vector<16x128xf32>
    %c2_68 = arith.constant 2 : index
    %c0_69 = arith.constant 0 : index
    %c0_70 = arith.constant 0 : index
    %77 = vector.load %arg7[%c2_68, %c0_69, %c0_70] : memref<3x128x128xbf16, #tpu.memory_space<vmem>>, vector<1x128x128xbf16>
    %78 = vector.shape_cast %77 : vector<1x128x128xbf16> to vector<128x128xbf16>
    %cst_71 = arith.constant dense<0.000000e+00> : vector<16x128xf32>
    %79 = tpu.matmul %69, %78, %cst_71 {dimension_numbers = #tpu.dot_dimension_numbers<[1], [0], [0], [1], [0, 0, 1, 1], [], []>} : vector<16x128xbf16>, vector<128x128xbf16>, vector<16x128xf32> -> vector<16x128xf32>
    %80 = arith.addf %76, %79 : vector<16x128xf32>
    %c0_72 = arith.constant 0 : index
    %c0_73 = arith.constant 0 : index
    %81 = vector.load %arg8[%c0_72, %c0_73] : memref<1x128xf32, #tpu.memory_space<vmem>>, vector<1x128xf32>
    %82 = vector.broadcast %81 : vector<1x128xf32> to vector<16x128xf32>
    %83 = arith.addf %80, %82 : vector<16x128xf32>
    %84 = arith.addf %83, %35 : vector<16x128xf32>
    %cst_74 = arith.constant 0.000000e+00 : f32
    %85 = vector.broadcast %cst_74 : f32 to vector<16x128xf32>
    %86 = arith.maximumf %84, %85 : vector<16x128xf32>
    %c0_75 = arith.constant 0 : index
    %c0_76 = arith.constant 0 : index
    %87 = vector.load %arg10[%c0_75, %c0_76] : memref<2x16xbf16, #tpu.memory_space<vmem>>, vector<2x16xbf16>
    %88 = arith.truncf %86 : vector<16x128xf32> to vector<16x128xbf16>
    %cst_77 = arith.constant dense<0.000000e+00> : vector<2x128xf32>
    %89 = tpu.matmul %87, %88, %cst_77 {dimension_numbers = #tpu.dot_dimension_numbers<[1], [0], [0], [1], [0, 0, 1, 1], [], []>} : vector<2x16xbf16>, vector<16x128xbf16>, vector<2x128xf32> -> vector<2x128xf32>
    %90 = arith.truncf %89 : vector<2x128xf32> to vector<2x128xbf16>
    %c0_78 = arith.constant 0 : index
    %c0_79 = arith.constant 0 : index
    %91 = vector.load %arg11[%c0_78, %c0_79] : memref<128x128xbf16, #tpu.memory_space<vmem>>, vector<128x128xbf16>
    %cst_80 = arith.constant dense<0.000000e+00> : vector<2x128xf32>
    %92 = tpu.matmul %90, %91, %cst_80 {dimension_numbers = #tpu.dot_dimension_numbers<[1], [0], [0], [1], [0, 0, 1, 1], [], []>} : vector<2x128xbf16>, vector<128x128xbf16>, vector<2x128xf32> -> vector<2x128xf32>
    %c0_81 = arith.constant 0 : index
    %c0_82 = arith.constant 0 : index
    %93 = vector.load %arg12[%c0_81, %c0_82] : memref<2x128xf32, #tpu.memory_space<vmem>>, vector<2x128xf32>
    tpu.vector_store %arg12[%c0_81, %c0_82], %92 {strides = array<i32>} : memref<2x128xf32, #tpu.memory_space<vmem>>, vector<2x128xf32>,
    return
  }
}

</mosaic_0001>

<bundles_post_ra>
// kernel: restnest_fex_forward.1
= control target key start
LH: loop header
LB: loop body
LE: loop exit
PB: predicated region body
PF: predicated region fallthrough
CT: control target
= control target key end

     0   :  { %17 = vsyncpa [#allocation3], 0  ;;  %s2921_s0 = inlined_call_operand.vmem [shape: bf16[32,128], index: 0, kind: input, shape index: {}]   ;;  %s2922_s1 = inlined_call_operand.vmem [shape: bf16[3,128,256], index: 1, kind: input, shape index: {}]   ;;  %s2923_s2 = inlined_call_operand.hbm [shape: f32[1,256], index: 2, kind: input, shape index: {}]   ;;  %s2924_s3 = inlined_call_operand.hbm [shape: bf16[2,32,32], index: 3, kind: input, shape index: {}]   ;;  %s2925_s4 = inlined_call_operand.vmem [shape: bf16[2,16,32], index: 4, kind: input, shape index: {}]   ;;  %s2926_s5 = inlined_call_operand.vmem [shape: bf16[3,128,128], index: 5, kind: input, shape index: {}]   ;;  %s2927_s6 = inlined_call_operand.vmem [shape: f32[1,128], index: 6, kind: input, shape index: {}]   ;;  %s2928_s7 = inlined_call_operand.vmem [shape: bf16[3,128,128], index: 7, kind: input, shape index: {}]   ;;  %s2929_s8 = inlined_call_operand.hbm [shape: f32[1,128], index: 8, kind: input, shape index: {}]   ;;  %s2930_s9 = inlined_call_operand.hbm [shape: bf16[2,16,16], index: 9, kind: input, shape index: {}]   ;;  %s2931_s10 = inlined_call_operand.hbm [shape: bf16[2,16], index: 10, kind: input, shape index: {}]   ;;  %s2932_s11 = inlined_call_operand.hbm [shape: bf16[128,128], index: 11, kind: input, shape index: {}]   ;;  %s2933_s12 = inlined_call_operand.hbm [shape: f32[2,128], index: 12, kind: output, shape index: {}]  }
   0x1   :  { %18 = vsyncpa [#allocation6], 0 }
   0x2   :  { %19 = vsyncpa [#allocation9], 0 }
   0x3   :  { %20 = vsyncpa [#allocation12], 0  ;;  %s41_s23 = sshll.u32 %s2924_s3, 4  ;;  %s42_s23 = int_to_ptr.hbm [resolvable:$true] %s41_s23 }
   0x4   :  { %21 = vsyncpa [#allocation4], 0  ;;  %s2325_s24 = smov [#allocation5]   ;;  %s73_s28 = sshll.u32 %s2930_s9, 4  ;;  %s74_s28 = int_to_ptr.hbm [resolvable:$true] %s73_s28 }
   0x5   :  { %s43_s25 = sshll.u32 %s2325_s24, 4  ;;  %s2326_s29 = smov 64   ;;  %s44_s25 = int_to_ptr.vmem [resolvable:$true] %s43_s25 }
   0x6   :  { %s2327_s30 = smov 4   ;;  %s2328_s13 = smov [#allocation8]  }
   0x7   :  { %49 = dma.hbm_to_vmem [thread:$0]  %s42_s23, 512, %s44_s25, [#allocation6], %s2326_s29, %s2326_s29, %s2327_s30  }
   0x8   :  { %s75_s14 = sshll.u32 %s2328_s13, 4  ;;  %s31_s16 = sshll.u32 %s2923_s2, 4  ;;  %s76_s14 = int_to_ptr.vmem [resolvable:$true] %s75_s14  ;;  %s32_s16 = int_to_ptr.hbm [resolvable:$true] %s31_s16 }
   0x9   :  { %81 = dma.hbm_to_vmem [thread:$0]  %s74_s28, 256, %s76_s14, [#allocation9], %s2326_s29, %s2326_s29, %s2327_s30  }
   0xa   :  { %s63_s18 = sshll.u32 %s2929_s8, 4  ;;  %s2329_s19 = smov [#allocation2]   ;;  %s64_s18 = int_to_ptr.hbm [resolvable:$true] %s63_s18 }
   0xb   :  { %s33_s20 = sshll.u32 %s2329_s19, 4  ;;  %s2330_s21 = smov [#allocation7]   ;;  %s34_s20 = int_to_ptr.vmem [resolvable:$true] %s33_s20 }
   0xc   :  { %36 = dma.hbm_to_vmem [thread:$0]  %s32_s16, 32, %s34_s20, [#allocation3]  }
   0xd   :  { %s65_s22 = sshll.u32 %s2330_s21, 4  ;;  %s87_s2 = sshll.u32 %s2931_s10, 4  ;;  %s66_s22 = int_to_ptr.vmem [resolvable:$true] %s65_s22  ;;  %s88_s2 = int_to_ptr.hbm [resolvable:$true] %s87_s2 }
   0xe   :  { %68 = dma.hbm_to_vmem [thread:$0]  %s64_s18, 16, %s66_s22, [#allocation6]  }
   0xf   :  { %s97_s27 = sshll.u32 %s2932_s11, 4  ;;  %s2331_s28 = smov [#allocation10]   ;;  %s98_s27 = int_to_ptr.hbm [resolvable:$true] %s97_s27 }
  0x10   :  { %s89_s8 = sshll.u32 %s2331_s28, 4  ;;  %s2332_s13 = smov [#allocation11]   ;;  %s90_s8 = int_to_ptr.vmem [resolvable:$true] %s89_s8 }
  0x11   :  { %92 = dma.hbm_to_vmem [thread:$0]  %s88_s2, 16, %s90_s8, [#allocation9]  }
  0x12   :  { %s99_s14 = sshll.u32 %s2332_s13, 4  ;;  %s100_s14 = int_to_ptr.vmem [resolvable:$true] %s99_s14 }
  0x13   :  { %105 = dma.hbm_to_vmem [thread:$0]  %s98_s27, 1024, %s100_s14, [#allocation12], %s2326_s29, %s2326_s29, %s2327_s30  }
  0x14   :  { %2315 = dma.done.wait [#allocation3], 32  }
  0x15   :  { %2316 = vsyncadd [#allocation3], 4294967264 }
  0x16   :  { %2317 = dma.done.wait [#allocation6], 528  }
  0x17   :  { %2318 = vsyncadd [#allocation6], 4294966768 }
  0x18   :  { %2319 = dma.done.wait [#allocation9], 272  }
  0x19   :  { %2320 = vsyncadd [#allocation9], 4294967024 }
  0x1a   :  { %2321 = dma.done.wait [#allocation12], 1024  }
  0x1b   :  { %2322 = vsyncadd [#allocation12], 4294966272  ;;  %v2429_v0 = vld [vmem:[%s2921_s0 + $0x8] sm:$0xff]  ;;  %v2436_v1 = vld [vmem:[%s2921_s0] sm:$0xff]  ;;  %vm161_vm0 = vcmask 261120   ;;  %vm760_vm1 = vcmask 130048  }
  0x1c   :  { %174 = vmatpush.bf16.msra.mxu0 %v2429_v0  ;;  %216 = vmatpush.bf16.msra.mxu1 %v2429_v0  ;;  %v1549_v2 = vld [vmem:[%s2922_s1 + $0xf0] sm:$0xf]  ;;  %v2051_v3 = vld [vmem:[%s2922_s1 + $0xf4] sm:$0xf0]  ;;  %v1541_v5 = vld [vmem:[%s2922_s1 + $0xe0] sm:$0xf] }
  0x1d   :  { %v1550_v4 = vor.u32 %v2051_v3, %v1549_v2  ;;  %v2049_v6 = vld [vmem:[%s2922_s1 + $0xe4] sm:$0xf0]  ;;  %v2018_v8 = vld [vmem:[#allocation5 + $0x10] sm:$0xff]  ;;  %v1551_v10 = vld [vmem:[%s2922_s1 + $0xf8] sm:$0xf0] }
  0x1e   :  { %v2016_v7 = vld [vmem:[#allocation5] sm:$0xff]  ;;  %v2050_v9 = vld [vmem:[%s2922_s1 + $0xf4] sm:$0xf]  ;;  %v1542_v11 = vor.u32 %v2049_v6, %v1541_v5  ;;  %v1533_v14 = vld [vmem:[%s2922_s1 + $0xd0] sm:$0xf] }
  0x1f   :  { %344 = vmatpush.bf16.msra.mxu2 %v1550_v4  ;;  %v1554_v12 = vor.u32 %v2050_v9, %v1551_v10  ;;  %v2048_v13 = vld [vmem:[%s2922_s1 + $0xe4] sm:$0xf]  ;;  %v2047_v15 = vld [vmem:[%s2922_s1 + $0xd4] sm:$0xf0]  ;;  %v1543_v16 = vld [vmem:[%s2922_s1 + $0xe8] sm:$0xf0] }
  0x20   :  { %175 = vmatpush.bf16.msra.mxu0 %v2436_v1  ;;  %217 = vmatpush.bf16.msra.mxu1 %v2436_v1  ;;  %v1546_v17 = vor.u32 %v2048_v13, %v1543_v16  ;;  %v2046_v18 = vld [vmem:[%s2922_s1 + $0xd4] sm:$0xf]  ;;  %v1535_v19 = vld [vmem:[%s2922_s1 + $0xd8] sm:$0xf0]  ;;  %v1534_v20 = vor.u32 %v2047_v15, %v1533_v14  ;;  %v1525_v21 = vld [vmem:[%s2922_s1 + $0xc0] sm:$0xf] }
  0x21   :  { %363 = vmatpush.bf16.msra.mxu3 %v1554_v12  ;;  %v2045_v22 = vld [vmem:[%s2922_s1 + $0xc4] sm:$0xf0]  ;;  %v1613_v23 = vld [vmem:[%s2922_s1 + $0x70] sm:$0xf]  ;;  %v2035_v24 = vld [vmem:[%s2922_s1 + $0x74] sm:$0xf0]  ;;  %v1538_v27 = vor.u32 %v2046_v18, %v1535_v19 }
  0x22   :  { %v2034_v25 = vld [vmem:[%s2922_s1 + $0x74] sm:$0xf]  ;;  %v1615_v26 = vld [vmem:[%s2922_s1 + $0x78] sm:$0xf0]  ;;  %v2044_v28 = vld [vmem:[%s2922_s1 + $0xc4] sm:$0xf]  ;;  %v1614_v29 = vor.u32 %v2035_v24, %v1613_v23  ;;  %v1526_v34 = vor.u32 %v2045_v22, %v1525_v21 }
  0x23   :  { %1463 = vmatmul.msk.bf16.vlgmr.msra.gmra.mxu0 %vm161_vm0, %v2016_v7  ;;  %1473 = vmatmul.msk.bf16.vlgmr.msra.gmra.mxu1 %vm161_vm0, %v2018_v8  ;;  %v1618_v30 = vor.u32 %v2034_v25, %v1615_v26  ;;  %v1527_v31 = vld [vmem:[%s2922_s1 + $0xc8] sm:$0xf0]  ;;  %v1605_v32 = vld [vmem:[%s2922_s1 + $0x60] sm:$0xf]  ;;  %v2033_v33 = vld [vmem:[%s2922_s1 + $0x64] sm:$0xf0] }
  0x24   :  { %345 = vmatpush.bf16.msra.mxu2 %v1542_v11  ;;  %462 = vmatpush.bf16.msrb.mxu0 %v1614_v29  ;;  %v1606_v35 = vor.u32 %v2033_v33, %v1605_v32  ;;  %v2032_v36 = vld [vmem:[%s2922_s1 + $0x64] sm:$0xf]  ;;  %v1607_v37 = vld [vmem:[%s2922_s1 + $0x68] sm:$0xf0]  ;;  %v1517_v38 = vld [vmem:[%s2922_s1 + $0xb0] sm:$0xf]  ;;  %v1530_v41 = vor.u32 %v2044_v28, %v1527_v31 }
  0x25   :  { %364 = vmatpush.bf16.msra.mxu3 %v1546_v17  ;;  %v2043_v39 = vld [vmem:[%s2922_s1 + $0xb4] sm:$0xf0]  ;;  %481 = vmatpush.bf16.msrb.mxu1 %v1618_v30  ;;  %v1610_v40 = vor.u32 %v2032_v36, %v1607_v37  ;;  %v1597_v42 = vld [vmem:[%s2922_s1 + $0x50] sm:$0xf]  ;;  %v2030_v44 = vld [vmem:[%s2922_s1 + $0x54] sm:$0xf] }
  0x26   :  { %v2031_v43 = vld [vmem:[%s2922_s1 + $0x54] sm:$0xf0]  ;;  %v2042_v45 = vld [vmem:[%s2922_s1 + $0xb4] sm:$0xf]  ;;  %v1519_v46 = vld [vmem:[%s2922_s1 + $0xb8] sm:$0xf0]  ;;  %v1518_v48 = vor.u32 %v2043_v39, %v1517_v38 }
  0x27   :  { %v1599_v47 = vld [vmem:[%s2922_s1 + $0x58] sm:$0xf0]  ;;  %v1509_v49 = vld [vmem:[%s2922_s1 + $0xa0] sm:$0xf]  ;;  %v1598_v50 = vor.u32 %v2031_v43, %v1597_v42  ;;  %v2017_v51 = vld [vmem:[#allocation5 + $0x8] sm:$0xff]  ;;  %v1522_v56 = vor.u32 %v2042_v45, %v1519_v46 }
  0x28   :  { %346 = vmatpush.bf16.msra.mxu2 %v1534_v20  ;;  %463 = vmatpush.bf16.msrb.mxu0 %v1606_v35  ;;  %v2041_v52 = vld [vmem:[%s2922_s1 + $0xa4] sm:$0xf0]  ;;  %v1602_v53 = vor.u32 %v2030_v44, %v1599_v47  ;;  %v1589_v54 = vld [vmem:[%s2922_s1 + $0x40] sm:$0xf]  ;;  %v2028_v57 = vld [vmem:[%s2922_s1 + $0x44] sm:$0xf] }
  0x29   :  { %365 = vmatpush.bf16.msra.mxu3 %v1538_v27  ;;  %482 = vmatpush.bf16.msrb.mxu1 %v1610_v40  ;;  %v2029_v55 = vld [vmem:[%s2922_s1 + $0x44] sm:$0xf0]  ;;  %v1591_v58 = vld [vmem:[%s2922_s1 + $0x48] sm:$0xf0]  ;;  %v2019_v59 = vld [vmem:[#allocation5 + $0x18] sm:$0xff]  ;;  %v1510_v62 = vor.u32 %v2041_v52, %v1509_v49 }
  0x2a   :  { %v2040_v60 = vld [vmem:[%s2922_s1 + $0xa4] sm:$0xf]  ;;  %v1511_v61 = vld [vmem:[%s2922_s1 + $0xa8] sm:$0xf0]  ;;  %v1501_v63 = vld [vmem:[%s2922_s1 + $0x90] sm:$0xf]  ;;  %v1590_v3 = vor.u32 %v2029_v55, %v1589_v54  ;;  %v1594_v4 = vor.u32 %v2028_v57, %v1591_v58 }
  0x2b   :  { %v2039_v2 = vld [vmem:[%s2922_s1 + $0x94] sm:$0xf0]  ;;  %v1581_v5 = vld [vmem:[%s2922_s1 + $0x30] sm:$0xf]  ;;  %v1514_v7 = vor.u32 %v2040_v60, %v1511_v61  ;;  %v2026_v8 = vld [vmem:[%s2922_s1 + $0x34] sm:$0xf] }
  0x2c   :  { %347 = vmatpush.bf16.msra.mxu2 %v1526_v34  ;;  %464 = vmatpush.bf16.msrb.mxu0 %v1598_v50  ;;  %v2027_v6 = vld [vmem:[%s2922_s1 + $0x34] sm:$0xf0]  ;;  %v1583_v9 = vld [vmem:[%s2922_s1 + $0x38] sm:$0xf0]  ;;  %v2038_v10 = vld [vmem:[%s2922_s1 + $0x94] sm:$0xf]  ;;  %v1502_v12 = vor.u32 %v2039_v2, %v1501_v63 }
  0x2d   :  { %366 = vmatpush.bf16.msra.mxu3 %v1530_v41  ;;  %483 = vmatpush.bf16.msrb.mxu1 %v1602_v53  ;;  %v1503_v11 = vld [vmem:[%s2922_s1 + $0x98] sm:$0xf0]  ;;  %v1582_v13 = vor.u32 %v2027_v6, %v1581_v5  ;;  %v1493_v14 = vld [vmem:[%s2922_s1 + $0x80] sm:$0xf]  ;;  %v2037_v15 = vld [vmem:[%s2922_s1 + $0x84] sm:$0xf0]  ;;  %v1586_v16 = vor.u32 %v2026_v8, %v1583_v9 }
  0x2e   :  { %v1693_v17 = vld [vmem:[%s2922_s1 + $0x170] sm:$0xf]  ;;  %v2067_v18 = vld [vmem:[%s2922_s1 + $0x174] sm:$0xf0]  ;;  %v1506_v19 = vor.u32 %v2038_v10, %v1503_v11  ;;  %v2036_v20 = vld [vmem:[%s2922_s1 + $0x84] sm:$0xf]  ;;  %v1494_v22 = vor.u32 %v2037_v15, %v1493_v14 }
  0x2f   :  { %v1495_v21 = vld [vmem:[%s2922_s1 + $0x88] sm:$0xf0]  ;;  %v2066_v23 = vld [vmem:[%s2922_s1 + $0x174] sm:$0xf]  ;;  %v1695_v24 = vld [vmem:[%s2922_s1 + $0x178] sm:$0xf0]  ;;  %v1694_v25 = vor.u32 %v2067_v18, %v1693_v17 }
  0x30   :  { %348 = vmatpush.bf16.msra.mxu2 %v1518_v48  ;;  %465 = vmatpush.bf16.msrb.mxu0 %v1590_v3  ;;  %v1685_v26 = vld [vmem:[%s2922_s1 + $0x160] sm:$0xf]  ;;  %v2065_v27 = vld [vmem:[%s2922_s1 + $0x164] sm:$0xf0]  ;;  %v1498_v28 = vor.u32 %v2036_v20, %v1495_v21  ;;  %v2618_v29 = vor.u32 %v2066_v23, %v1695_v24  ;;  %v1677_v31 = vld [vmem:[%s2922_s1 + $0x150] sm:$0xf] }
  0x31   :  { %367 = vmatpush.bf16.msra.mxu3 %v1522_v56  ;;  %484 = vmatpush.bf16.msrb.mxu1 %v1594_v4  ;;  %v1686_v30 = vor.u32 %v2065_v27, %v1685_v26  ;;  %v2063_v32 = vld [vmem:[%s2922_s1 + $0x154] sm:$0xf0]  ;;  %v1669_v34 = vld [vmem:[%s2922_s1 + $0x140] sm:$0xf]  ;;  %v2061_v35 = vld [vmem:[%s2922_s1 + $0x144] sm:$0xf0] }
  0x32   :  { %v1678_v33 = vor.u32 %v2063_v32, %v1677_v31  ;;  %v1670_v36 = vor.u32 %v2061_v35, %v1669_v34  ;;  %v1661_v37 = vld [vmem:[%s2922_s1 + $0x130] sm:$0xf]  ;;  %v2059_v38 = vld [vmem:[%s2922_s1 + $0x134] sm:$0xf0]  ;;  %v1573_v39 = vld [vmem:[%s2922_s1 + $0x20] sm:$0xf] }
  0x33   :  { %1464 = vmatmul.msk.bf16.gmra.mxu0 %vm161_vm0, %v2017_v51  ;;  %1474 = vmatmul.msk.bf16.gmra.mxu1 %vm161_vm0, %v2019_v59  ;;  %v2025_v40 = vld [vmem:[%s2922_s1 + $0x24] sm:$0xf0]  ;;  %v2024_v41 = vld [vmem:[%s2922_s1 + $0x24] sm:$0xf]  ;;  %v1575_v43 = vld [vmem:[%s2922_s1 + $0x28] sm:$0xf0] }
  0x34   :  { %349 = vmatpush.bf16.msra.mxu2 %v1510_v62  ;;  %466 = vmatpush.bf16.msrb.mxu0 %v1582_v13  ;;  %v1574_v42 = vor.u32 %v2025_v40, %v1573_v39  ;;  %v2057_v44 = vld [vmem:[%s2922_s1 + $0x124] sm:$0xf0]  ;;  %v1578_v45 = vor.u32 %v2024_v41, %v1575_v43  ;;  %v2064_v47 = vld [vmem:[%s2922_s1 + $0x164] sm:$0xf]  ;;  %v1687_v48 = vld [vmem:[%s2922_s1 + $0x168] sm:$0xf0] }
  0x35   :  { %368 = vmatpush.bf16.msra.mxu3 %v1514_v7  ;;  %485 = vmatpush.bf16.msrb.mxu1 %v1586_v16  ;;  %v1690_v49 = vor.u32 %v2064_v47, %v1687_v48  ;;  %v1565_v50 = vld [vmem:[%s2922_s1 + $0x10] sm:$0xf]  ;;  %v2023_v51 = vld [vmem:[%s2922_s1 + $0x14] sm:$0xf0]  ;;  %v2022_v52 = vld [vmem:[%s2922_s1 + $0x14] sm:$0xf] }
  0x36   :  { %v1566_v53 = vor.u32 %v2023_v51, %v1565_v50  ;;  %v1567_v54 = vld [vmem:[%s2922_s1 + $0x18] sm:$0xf0]  ;;  %v1645_v55 = vld [vmem:[%s2922_s1 + $0x110] sm:$0xf]  ;;  %v2055_v56 = vld [vmem:[%s2922_s1 + $0x114] sm:$0xf0] }
  0x37   :  { %v1570_v57 = vor.u32 %v2022_v52, %v1567_v54  ;;  %v1646_v58 = vor.u32 %v2055_v56, %v1645_v55  ;;  %v2062_v59 = vld [vmem:[%s2922_s1 + $0x154] sm:$0xf]  ;;  %v1679_v60 = vld [vmem:[%s2922_s1 + $0x158] sm:$0xf0]  ;;  %v1557_v62 = vld [vmem:[%s2922_s1] sm:$0xf] }
  0x38   :  { %350 = vmatpush.bf16.msra.mxu2 %v1502_v12  ;;  %467 = vmatpush.bf16.msrb.mxu0 %v1574_v42  ;;  %v1682_v61 = vor.u32 %v2062_v59, %v1679_v60  ;;  %v2021_v63 = vld [vmem:[%s2922_s1 + $0x4] sm:$0xf0]  ;;  %v2020_v2 = vld [vmem:[%s2922_s1 + $0x4] sm:$0xf]  ;;  %v1559_v4 = vld [vmem:[%s2922_s1 + $0x8] sm:$0xf0] }
  0x39   :  { %369 = vmatpush.bf16.msra.mxu3 %v1506_v19  ;;  %486 = vmatpush.bf16.msrb.mxu1 %v1578_v45  ;;  %v1558_v3 = vor.u32 %v2021_v63, %v1557_v62  ;;  %v1637_v5 = vld [vmem:[%s2922_s1 + $0x100] sm:$0xf]  ;;  %v2053_v6 = vld [vmem:[%s2922_s1 + $0x104] sm:$0xf0]  ;;  %v1562_v7 = vor.u32 %v2020_v2, %v1559_v4  ;;  %v2060_v9 = vld [vmem:[%s2922_s1 + $0x144] sm:$0xf] }
  0x3a   :  { %v1638_v8 = vor.u32 %v2053_v6, %v1637_v5  ;;  %v1671_v10 = vld [vmem:[%s2922_s1 + $0x148] sm:$0xf0]  ;;  %v2058_v12 = vld [vmem:[%s2922_s1 + $0x134] sm:$0xf]  ;;  %v1663_v13 = vld [vmem:[%s2922_s1 + $0x138] sm:$0xf0] }
  0x3b   :  { %v1674_v11 = vor.u32 %v2060_v9, %v1671_v10  ;;  %v1666_v14 = vor.u32 %v2058_v12, %v1663_v13  ;;  %v2056_v15 = vld [vmem:[%s2922_s1 + $0x124] sm:$0xf]  ;;  %v1655_v16 = vld [vmem:[%s2922_s1 + $0x128] sm:$0xf0]  ;;  %v2054_v18 = vld [vmem:[%s2922_s1 + $0x114] sm:$0xf] }
  0x3c   :  { %351 = vmatpush.bf16.msra.mxu2 %v1494_v22  ;;  %468 = vmatpush.bf16.msrb.mxu0 %v1566_v53  ;;  %v1658_v17 = vor.u32 %v2056_v15, %v1655_v16  ;;  %v1647_v19 = vld [vmem:[%s2922_s1 + $0x118] sm:$0xf0]  ;;  %v2052_v21 = vld [vmem:[%s2922_s1 + $0x104] sm:$0xf]  ;;  %v1639_v22 = vld [vmem:[%s2922_s1 + $0x108] sm:$0xf0] }
  0x3d   :  { %370 = vmatpush.bf16.msra.mxu3 %v1498_v28  ;;  %487 = vmatpush.bf16.msrb.mxu1 %v1570_v57  ;;  %v1650_v20 = vor.u32 %v2054_v18, %v1647_v19  ;;  %v1642_v23 = vor.u32 %v2052_v21, %v1639_v22  ;;  %v643_v55 = vld [vmem:[#allocation2] sm:$0x3] }
  0x3e   :  { %v646_v60 = vperm.slane %v643_v55, 1  ;;  %v645_v62 = vperm.slane %v643_v55, 0 }
  0x3f   :  { %352 = vmatmul.bf16.vlgmr.msra.gmra.mxu2 %v2436_v1 }
  0x40   :  { %597 = vmatpush.bf16.msrb.mxu2 %v1694_v25  ;;  %371 = vmatmul.bf16.vlgmr.msra.gmra.mxu3 %v2436_v1  ;;  %v1662_v1 = vor.u32 %v2059_v38, %v1661_v37 }
  0x41   :  { %2128 = vmatpush.bf16.msrb.mxu3 %v2618_v29  ;;  %469 = vmatpush.bf16.msrb.mxu0 %v1558_v3 }
  0x42   :  { %488 = vmatpush.bf16.msrb.mxu1 %v1562_v7 }
  0x44   :  { %598 = vmatpush.bf16.msrb.mxu2 %v1686_v30 }
  0x45   :  { %2129 = vmatpush.bf16.msrb.mxu3 %v1690_v49  ;;  %616 = vmatpush.bf16.msra.mxu0 %v2618_v29 }
  0x48   :  { %599 = vmatpush.bf16.msrb.mxu2 %v1678_v33 }
  0x49   :  { %2130 = vmatpush.bf16.msrb.mxu3 %v1682_v61  ;;  %617 = vmatpush.bf16.msra.mxu0 %v1690_v49 }
  0x4c   :  { %600 = vmatpush.bf16.msrb.mxu2 %v1670_v36 }
  0x4d   :  { %2131 = vmatpush.bf16.msrb.mxu3 %v1674_v11  ;;  %618 = vmatpush.bf16.msra.mxu0 %v1682_v61 }
  0x4f   :  { %357 = vmatmul.bf16.gmra.mxu2 %v2429_v0 }
  0x50   :  { %601 = vmatpush.bf16.msrb.mxu2 %v1662_v1  ;;  %376 = vmatmul.bf16.gmra.mxu3 %v2429_v0  ;;  %v1653_v0 = vld [vmem:[%s2922_s1 + $0x120] sm:$0xf] }
  0x51   :  { %v1654_v46 = vor.u32 %v2057_v44, %v1653_v0  ;;  %2132 = vmatpush.bf16.msrb.mxu3 %v1666_v14  ;;  %619 = vmatpush.bf16.msra.mxu0 %v1674_v11 }
  0x54   :  { %602 = vmatpush.bf16.msrb.mxu2 %v1654_v46 }
  0x55   :  { %2133 = vmatpush.bf16.msrb.mxu3 %v1658_v17  ;;  %620 = vmatpush.bf16.msra.mxu0 %v1666_v14 }
  0x58   :  { %603 = vmatpush.bf16.msrb.mxu2 %v1646_v58 }
  0x59   :  { %2134 = vmatpush.bf16.msrb.mxu3 %v1650_v20  ;;  %621 = vmatpush.bf16.msra.mxu0 %v1658_v17 }
  0x5c   :  { %604 = vmatpush.bf16.msrb.mxu2 %v1638_v8 }
  0x5d   :  { %2135 = vmatpush.bf16.msrb.mxu3 %v1642_v23  ;;  %622 = vmatpush.bf16.msra.mxu0 %v1650_v20 }
  0x61   :  { %623 = vmatpush.bf16.msra.mxu0 %v1642_v23 }
  0xa0   :  { %v177_v24 = vpop.f32.mrf.mxu0  ;;  %v219_v25 = vpop.f32.mrf.mxu1 }
  0xa8   :  { %v179_v26 = vpop.f32.mrf.mxu0  ;;  %v221_v27 = vpop.f32.mrf.mxu1 }
  0xa9   :  { %v187_v28 = vpack.c.bf16 %v179_v26, %v177_v24  ;;  %v229_v29 = vpack.c.bf16 %v221_v27, %v219_v25 }
  0xab   :  { %470 = vmatmul.bf16.vlgmr.msrb.gmra.mxu0 %v187_v28  ;;  %489 = vmatmul.bf16.vlgmr.msrb.gmra.mxu1 %v187_v28 }
  0xac   :  { %605 = vmatmul.bf16.vlgmr.msrb.gmra.mxu2 %v229_v29 }
  0xb0   :  { %v182_v30 = vpop.f32.mrf.mxu0  ;;  %v224_v31 = vpop.f32.mrf.mxu1 }
  0xb8   :  { %v184_v32 = vpop.f32.mrf.mxu0  ;;  %v226_v33 = vpop.f32.mrf.mxu1 }
  0xb9   :  { %v188_v34 = vpack.c.bf16 %v184_v32, %v182_v30  ;;  %v230_v35 = vpack.c.bf16 %v226_v33, %v224_v31  ;;  %v2068_v32 = vld [vmem:[%s2925_s4] sm:$0xff] }
  0xbb   :  { %475 = vmatmul.bf16.gmra.mxu0 %v188_v34  ;;  %494 = vmatmul.bf16.gmra.mxu1 %v188_v34 }
  0xbc   :  { %610 = vmatmul.bf16.gmra.mxu2 %v230_v35  ;;  %629 = vmatmul.bf16.vlgmr.msrb.gmra.mxu3 %v230_v35 }
  0xc2   :  { %v353_v36 = vpop.f32.mrf.mxu2 }
  0xc3   :  { %v372_v38 = vpop.f32.mrf.mxu3 }
  0xca   :  { %v355_v37 = vpop.f32.mrf.mxu2 }
  0xcb   :  { %624 = vmatmul.bf16.vlgmr.msra.gmra.mxu0 %v229_v29  ;;  %v374_v39 = vpop.f32.mrf.mxu3 }
  0xd2   :  { %v358_v1 = vpop.f32.mrf.mxu2 }
  0xd3   :  { %v377_v43 = vpop.f32.mrf.mxu3 }
  0xda   :  { %v360_v40 = vpop.f32.mrf.mxu2 }
  0xdb   :  { %v379_v46 = vpop.f32.mrf.mxu3 }
 0x128   :  { %v471_v41 = vpop.f32.mrf.mxu0  ;;  %v490_v42 = vpop.f32.mrf.mxu1 }
 0x129   :  { %v472_v61 = vadd.f32 %v471_v41, %v353_v36  ;;  %v491_v15 = vadd.f32 %v490_v42, %v372_v38  ;;  %v2069_v36 = vld [vmem:[%s2925_s4 + $0x8] sm:$0xff]  ;;  %v2086_v38 = vld [vmem:[%s2926_s5 + $0x70] sm:$0xff] }
 0x12a   :  { %v2082_v41 = vld [vmem:[%s2926_s5 + $0x50] sm:$0xff]  ;;  %v2081_v42 = vld [vmem:[%s2926_s5 + $0x48] sm:$0xff] }
 0x12f   :  { %v606_v0 = vpop.f32.mrf.mxu2 }
 0x130   :  { %v473_v44 = vpop.f32.mrf.mxu0  ;;  %v492_v45 = vpop.f32.mrf.mxu1  ;;  %v635_v4 = vadd.f32 %v606_v0, %v472_v61  ;;  %v2080_v0 = vld [vmem:[%s2926_s5 + $0x40] sm:$0xff] }
 0x131   :  { %v474_v57 = vadd.f32 %v473_v44, %v355_v37  ;;  %v493_v25 = vadd.f32 %v492_v45, %v374_v39  ;;  %v2087_v37 = vld [vmem:[%s2926_s5 + $0x78] sm:$0xff]  ;;  %v2084_v39 = vld [vmem:[%s2926_s5 + $0x60] sm:$0xff] }
 0x132   :  { %v649_v16 = vadd.f32 %v645_v62, %v635_v4  ;;  %v2079_v45 = vld [vmem:[%s2926_s5 + $0x38] sm:$0xff]  ;;  %v2076_v4 = vld [vmem:[%s2926_s5 + $0x20] sm:$0xff] }
 0x134   :  { %v657_v26 = vmax.f32 %v649_v16, 0.0 }
 0x137   :  { %v608_v47 = vpop.f32.mrf.mxu2 }
 0x138   :  { %v476_v48 = vpop.f32.mrf.mxu0  ;;  %v495_v49 = vpop.f32.mrf.mxu1  ;;  %v637_v63 = vadd.f32 %v608_v47, %v474_v57  ;;  %v2078_v47 = vld [vmem:[%s2926_s5 + $0x30] sm:$0xff] }
 0x139   :  { %v477_v53 = vadd.f32 %v476_v48, %v358_v1  ;;  %v496_v54 = vadd.f32 %v495_v49, %v377_v43  ;;  %v2085_v1 = vld [vmem:[%s2926_s5 + $0x68] sm:$0xff] }
 0x13a   :  { %v651_v12 = vadd.f32 %v645_v62, %v637_v63  ;;  %v2077_v49 = vld [vmem:[%s2926_s5 + $0x28] sm:$0xff] }
 0x13b   :  { %v2794_v63 = vld [vmem:[#allocation8 + $0x8] sm:$0xff] }
 0x13c   :  { %v659_v22 = vmax.f32 %v651_v12, 0.0  ;;  %v2072_v12 = vld [vmem:[%s2926_s5] sm:$0xff] }
 0x13e   :  { %v665_v30 = vpack.c.bf16 %v659_v22, %v657_v26  ;;  %v2109_v22 = vld [vmem:[%s2928_s7 + $0x68] sm:$0xff] }
 0x13f   :  { %v611_v50 = vpop.f32.mrf.mxu2  ;;  %v630_v51 = vpop.f32.mrf.mxu3  ;;  %v2105_v26 = vld [vmem:[%s2928_s7 + $0x48] sm:$0xff] }
 0x140   :  { %v478_v52 = vpop.f32.mrf.mxu0  ;;  %v497_v56 = vpop.f32.mrf.mxu1  ;;  %v639_v58 = vadd.f32 %v611_v50, %v477_v53  ;;  %v640_v59 = vadd.f32 %v630_v51, %v496_v54 }
 0x141   :  { %v479_v2 = vadd.f32 %v478_v52, %v360_v40  ;;  %v498_v3 = vadd.f32 %v497_v56, %v379_v46  ;;  %v2083_v40 = vld [vmem:[%s2926_s5 + $0x58] sm:$0xff] }
 0x142   :  { %v653_v7 = vadd.f32 %v645_v62, %v639_v58  ;;  %v654_v8 = vadd.f32 %v646_v60, %v640_v59 }
 0x144   :  { %v661_v17 = vmax.f32 %v653_v7, 0.0  ;;  %v662_v18 = vmax.f32 %v654_v8, 0.0  ;;  %v2091_v7 = vld [vmem:[%s2926_s5 + $0x98] sm:$0xff]  ;;  %v2074_v8 = vld [vmem:[%s2926_s5 + $0x10] sm:$0xff] }
 0x147   :  { %v613_v5 = vpop.f32.mrf.mxu2  ;;  %v632_v6 = vpop.f32.mrf.mxu3 }
 0x148   :  { %v641_v9 = vadd.f32 %v613_v5, %v479_v2  ;;  %v642_v10 = vadd.f32 %v632_v6, %v498_v3  ;;  %v625_v11 = vpop.f32.mrf.mxu0  ;;  %v2094_v2 = vld [vmem:[%s2926_s5 + $0xb0] sm:$0xff]  ;;  %v2093_v3 = vld [vmem:[%s2926_s5 + $0xa8] sm:$0xff]  ;;  %v2092_v5 = vld [vmem:[%s2926_s5 + $0xa0] sm:$0xff] }
 0x149   :  { %v636_v21 = vadd.f32 %v625_v11, %v491_v15  ;;  %v2075_v6 = vld [vmem:[%s2926_s5 + $0x18] sm:$0xff]  ;;  %v2089_v11 = vld [vmem:[%s2926_s5 + $0x88] sm:$0xff]  ;;  %v2110_v15 = vld [vmem:[%s2928_s7 + $0x70] sm:$0xff] }
 0x14a   :  { %v655_v13 = vadd.f32 %v645_v62, %v641_v9  ;;  %v656_v14 = vadd.f32 %v646_v60, %v642_v10  ;;  %v2792_v62 = vld [vmem:[#allocation8] sm:$0xff]  ;;  %v2090_v9 = vld [vmem:[%s2926_s5 + $0x90] sm:$0xff] }
 0x14b   :  { %v650_v28 = vadd.f32 %v646_v60, %v636_v21  ;;  %v2073_v10 = vld [vmem:[%s2926_s5 + $0x8] sm:$0xff] }
 0x14c   :  { %v663_v19 = vmax.f32 %v655_v13, 0.0  ;;  %v664_v20 = vmax.f32 %v656_v14, 0.0  ;;  %v2088_v13 = vld [vmem:[%s2926_s5 + $0x80] sm:$0xff]  ;;  %v2111_v14 = vld [vmem:[%s2928_s7 + $0x78] sm:$0xff] }
 0x14d   :  { %v658_v33 = vmax.f32 %v650_v28, 0.0 }
 0x14e   :  { %v667_v23 = vpack.c.bf16 %v663_v19, %v661_v17  ;;  %v668_v24 = vpack.c.bf16 %v664_v20, %v662_v18 }
 0x150   :  { %685 = vmatpush.bf16.msrb.mxu0 %v667_v23  ;;  %699 = vmatpush.bf16.msra.mxu1 %v668_v24  ;;  %v627_v27 = vpop.f32.mrf.mxu0 }
 0x151   :  { %v638_v29 = vadd.f32 %v627_v27, %v493_v25  ;;  %v2106_v25 = vld [vmem:[%s2928_s7 + $0x50] sm:$0xff]  ;;  %v2104_v27 = vld [vmem:[%s2928_s7 + $0x40] sm:$0xff] }
 0x153   :  { %v652_v31 = vadd.f32 %v646_v60, %v638_v29  ;;  %v2095_v60 = vld [vmem:[%s2926_s5 + $0xb8] sm:$0xff] }
 0x154   :  { %686 = vmatpush.bf16.msrb.mxu0 %v665_v30 }
 0x155   :  { %v660_v34 = vmax.f32 %v652_v31, 0.0 }
 0x157   :  { %1703 = vmatmul.msk.bf16.vlgmr.msrb.gmra.mxu0 %vm161_vm0, %v2068_v32  ;;  %v666_v35 = vpack.c.bf16 %v660_v34, %v658_v33  ;;  %v2103_v33 = vld [vmem:[%s2928_s7 + $0x38] sm:$0xff] }
 0x158   :  { %724 = vmatpush.bf16.msra.mxu0 %v667_v23  ;;  %v2108_v23 = vld [vmem:[%s2928_s7 + $0x60] sm:$0xff] }
 0x159   :  { %700 = vmatpush.bf16.msra.mxu1 %v666_v35 }
 0x15c   :  { %725 = vmatpush.bf16.msra.mxu0 %v665_v30  ;;  %1704 = vmatmul.msk.bf16.vlgmr.msra.gmra.mxu1 %vm161_vm0, %v2068_v32 }
 0x15d   :  { %738 = vmatpush.bf16.msrb.mxu1 %v668_v24  ;;  %v2107_v24 = vld [vmem:[%s2928_s7 + $0x58] sm:$0xff] }
 0x160   :  { %886 = vmatpush.bf16.msrb.mxu0 %v2087_v37  ;;  %v2102_v37 = vld [vmem:[%s2928_s7 + $0x30] sm:$0xff] }
 0x161   :  { %739 = vmatpush.bf16.msrb.mxu1 %v666_v35  ;;  %v2145_v35 = vld [vmem:[%s2927_s6] ss:$0 sm:$0xff]  ;;  %s1434_s6 = sshll.u32 %s2933_s12, 4  ;;  %s1435_s6 = int_to_ptr.hbm [resolvable:$true] %s1434_s6 }
 0x164   :  { %887 = vmatpush.bf16.msrb.mxu0 %v2086_v38 }
 0x165   :  { %948 = vmatpush.bf16.msra.mxu1 %v2079_v45  ;;  %v2100_v45 = vld [vmem:[%s2928_s7 + $0x20] sm:$0xff] }
 0x167   :  { %1711 = vmatmul.msk.bf16.vlgmr.msra.gmra.mxu0 %vm161_vm0, %v2069_v36 }
 0x168   :  { %888 = vmatpush.bf16.msrb.mxu0 %v2085_v1 }
 0x169   :  { %949 = vmatpush.bf16.msra.mxu1 %v2078_v47  ;;  %v2099_v47 = vld [vmem:[%s2928_s7 + $0x18] sm:$0xff] }
 0x16c   :  { %1712 = vmatmul.msk.bf16.vlgmr.msrb.gmra.mxu1 %vm161_vm0, %v2069_v36  ;;  %889 = vmatpush.bf16.msrb.mxu0 %v2084_v39 }
 0x16d   :  { %950 = vmatpush.bf16.msra.mxu1 %v2077_v49  ;;  %v2118_v49 = vld [vmem:[%s2928_s7 + $0xb0] sm:$0xff] }
 0x170   :  { %890 = vmatpush.bf16.msrb.mxu0 %v2083_v40 }
 0x171   :  { %951 = vmatpush.bf16.msra.mxu1 %v2076_v4 }
 0x174   :  { %891 = vmatpush.bf16.msrb.mxu0 %v2082_v41  ;;  %v2101_v41 = vld [vmem:[%s2928_s7 + $0x28] sm:$0xff] }
 0x175   :  { %952 = vmatpush.bf16.msra.mxu1 %v2075_v6 }
 0x178   :  { %892 = vmatpush.bf16.msrb.mxu0 %v2081_v42 }
 0x179   :  { %953 = vmatpush.bf16.msra.mxu1 %v2074_v8 }
 0x17c   :  { %893 = vmatpush.bf16.msrb.mxu0 %v2080_v0 }
 0x17d   :  { %954 = vmatpush.bf16.msra.mxu1 %v2073_v10 }
 0x180   :  { %1163 = vmatpush.bf16.msra.mxu0 %v2111_v14 }
 0x181   :  { %955 = vmatpush.bf16.msra.mxu1 %v2072_v12 }
 0x184   :  { %1164 = vmatpush.bf16.msra.mxu0 %v2110_v15 }
 0x185   :  { %1225 = vmatpush.bf16.msrb.mxu1 %v2103_v33 }
 0x188   :  { %1165 = vmatpush.bf16.msra.mxu0 %v2109_v22 }
 0x189   :  { %1226 = vmatpush.bf16.msrb.mxu1 %v2102_v37 }
 0x18c   :  { %1166 = vmatpush.bf16.msra.mxu0 %v2108_v23  ;;  %v1330_v23 = vld [vmem:[#allocation10] sm:$0x1] }
 0x18d   :  { %1227 = vmatpush.bf16.msrb.mxu1 %v2101_v41 }
 0x190   :  { %1167 = vmatpush.bf16.msra.mxu0 %v2107_v24  ;;  %v2126_v24 = vld [vmem:[#allocation11 + $0x30] sm:$0xff] }
 0x191   :  { %1228 = vmatpush.bf16.msrb.mxu1 %v2100_v45 }
 0x194   :  { %1168 = vmatpush.bf16.msra.mxu0 %v2106_v25  ;;  %v2125_v25 = vld [vmem:[#allocation11 + $0x28] sm:$0xff] }
 0x195   :  { %1229 = vmatpush.bf16.msrb.mxu1 %v2099_v47 }
 0x198   :  { %1169 = vmatpush.bf16.msra.mxu0 %v2105_v26  ;;  %v2124_v26 = vld [vmem:[#allocation11 + $0x20] sm:$0xff] }
 0x19c   :  { %1170 = vmatpush.bf16.msra.mxu0 %v2104_v27  ;;  %v2123_v27 = vld [vmem:[#allocation11 + $0x18] sm:$0xff] }
 0x1d4   :  { %v688_v43 = vpop.f32.mrf.mxu0 }
 0x1d9   :  { %v702_v44 = vpop.f32.mrf.mxu1 }
 0x1dc   :  { %v690_v46 = vpop.f32.mrf.mxu0 }
 0x1e1   :  { %v704_v48 = vpop.f32.mrf.mxu1 }
 0x1e4   :  { %v727_v50 = vpop.f32.mrf.mxu0 }
 0x1e5   :  { %v746_v55 = vmax.f32 %v688_v43, %v727_v50  ;;  %v2097_v50 = vld [vmem:[%s2928_s7 + $0x8] sm:$0xff] }
 0x1e9   :  { %v741_v51 = vpop.f32.mrf.mxu1 }
 0x1ea   :  { %v747_v53 = vmax.f32 %v702_v44, %v741_v51  ;;  %v2117_v51 = vld [vmem:[%s2928_s7 + $0xa8] sm:$0xff] }
 0x1ec   :  { %v729_v52 = vpop.f32.mrf.mxu0  ;;  %v2783_v58 = vmax.f32 %v746_v55, %v747_v53  ;;  %v2116_v53 = vld [vmem:[%s2928_s7 + $0xa0] sm:$0xff]  ;;  %v2114_v55 = vld [vmem:[%s2928_s7 + $0x90] sm:$0xff] }
 0x1ed   :  { %v748_v56 = vmax.f32 %v690_v46, %v729_v52  ;;  %v2119_v46 = vld [vmem:[%s2928_s7 + $0xb8] sm:$0xff]  ;;  %v2096_v52 = vld [vmem:[%s2928_s7] sm:$0xff] }
 0x1f1   :  { %v743_v54 = vpop.f32.mrf.mxu1 }
 0x1f2   :  { %v749_v57 = vmax.f32 %v704_v48, %v743_v54  ;;  %v2098_v48 = vld [vmem:[%s2928_s7 + $0x10] sm:$0xff]  ;;  %v2115_v54 = vld [vmem:[%s2928_s7 + $0x98] sm:$0xff] }
 0x1f3   :  { %1230 = vmatpush.bf16.msrb.mxu1 %v2098_v48 }
 0x1f4   :  { %v2785_v59 = vmax.f32 %v748_v56, %v749_v57  ;;  %v2113_v56 = vld [vmem:[%s2928_s7 + $0x88] sm:$0xff]  ;;  %v2112_v57 = vld [vmem:[%s2928_s7 + $0x80] sm:$0xff]  ;;  %s2333_s7 = smov [#allocation13]  }
 0x1f5   :  { %s1432_s0 = sshll.u32 %s2333_s7, 4  ;;  %s1433_s0 = int_to_ptr.vmem [resolvable:$true] %s1432_s0 }
 0x1f6   :  { %v752_v61 = vpack.c.bf16 %v2785_v59, %v2783_v58 }
 0x1f7   :  { %1231 = vmatpush.bf16.msrb.mxu1 %v2097_v50 }
 0x1f8   :  { %771 = vmatpush.bf16.msra.mxu2 %v752_v61  ;;  %797 = vmatpush.bf16.msra.mxu3 %v752_v61 }
 0x1f9   :  { %894 = vmatmul.bf16.vlgmr.msrb.gmra.mxu0 %v752_v61 }
 0x1fb   :  { %1717 = vmatmul.msk.bf16.vlgmr.msra.gmra.mxu2 %vm760_vm1, %v2792_v62  ;;  %1722 = vmatmul.msk.bf16.vlgmr.msra.gmra.mxu3 %vm760_vm1, %v2794_v63 }
 0x1fc   :  { %1027 = vmatpush.bf16.msrb.mxu2 %v2095_v60  ;;  %1232 = vmatpush.bf16.msrb.mxu1 %v2096_v52 }
 0x200   :  { %1028 = vmatpush.bf16.msrb.mxu2 %v2094_v2 }
 0x204   :  { %1029 = vmatpush.bf16.msrb.mxu2 %v2093_v3 }
 0x208   :  { %1030 = vmatpush.bf16.msrb.mxu2 %v2092_v5 }
 0x20c   :  { %1031 = vmatpush.bf16.msrb.mxu2 %v2091_v7 }
 0x210   :  { %1032 = vmatpush.bf16.msrb.mxu2 %v2090_v9  ;;  %v2146_v9 = vld [vmem:[#allocation7] ss:$0 sm:$0xff] }
 0x214   :  { %1033 = vmatpush.bf16.msrb.mxu2 %v2089_v11 }
 0x218   :  { %1034 = vmatpush.bf16.msrb.mxu2 %v2088_v13 }
 0x21c   :  { %1304 = vmatpush.bf16.msra.mxu2 %v2119_v46 }
 0x220   :  { %1305 = vmatpush.bf16.msra.mxu2 %v2118_v49 }
 0x224   :  { %1306 = vmatpush.bf16.msra.mxu2 %v2117_v51 }
 0x228   :  { %1307 = vmatpush.bf16.msra.mxu2 %v2116_v53 }
 0x22c   :  { %1308 = vmatpush.bf16.msra.mxu2 %v2115_v54 }
 0x230   :  { %1309 = vmatpush.bf16.msra.mxu2 %v2114_v55 }
 0x234   :  { %1310 = vmatpush.bf16.msra.mxu2 %v2113_v56 }
 0x238   :  { %1311 = vmatpush.bf16.msra.mxu2 %v2112_v57 }
 0x276   :  { %v895_v29 = vpop.f32.mrf.mxu0 }
 0x27e   :  { %v773_v16 = vpop.f32.mrf.mxu2  ;;  %v799_v17 = vpop.f32.mrf.mxu3 }
 0x27f   :  { %v897_v36 = vpop.f32.mrf.mxu0 }
 0x286   :  { %v775_v18 = vpop.f32.mrf.mxu2  ;;  %v801_v20 = vpop.f32.mrf.mxu3 }
 0x287   :  { %v778_v19 = vpack.c.bf16 %v775_v18, %v773_v16  ;;  %v804_v21 = vpack.c.bf16 %v801_v20, %v799_v17 }
 0x289   :  { %956 = vmatmul.bf16.vlgmr.msra.gmra.mxu1 %v778_v19  ;;  %1035 = vmatmul.bf16.vlgmr.msrb.gmra.mxu2 %v804_v21  ;;  %v2127_v21 = vld [vmem:[#allocation11 + $0x38] sm:$0xff] }
 0x306   :  { %v957_v28 = vpop.f32.mrf.mxu1 }
 0x307   :  { %v958_v31 = vadd.f32 %v957_v28, %v895_v29  ;;  %v2120_v28 = vld [vmem:[#allocation11] sm:$0xff] }
 0x30c   :  { %v1036_v30 = vpop.f32.mrf.mxu2 }
 0x30d   :  { %v1041_v34 = vadd.f32 %v1036_v30, %v958_v31 }
 0x30e   :  { %v959_v32 = vpop.f32.mrf.mxu1 }
 0x30f   :  { %v960_v38 = vadd.f32 %v959_v32, %v897_v36  ;;  %v1047_v39 = vadd.f32 %v2145_v35, %v1041_v34 }
 0x311   :  { %v1049_v43 = vmax.f32 %v1047_v39, 0.0 }
 0x314   :  { %v1038_v1 = vpop.f32.mrf.mxu2 }
 0x315   :  { %v1042_v40 = vadd.f32 %v1038_v1, %v960_v38 }
 0x317   :  { %v1048_v42 = vadd.f32 %v2145_v35, %v1042_v40 }
 0x319   :  { %v1050_v0 = vmax.f32 %v1048_v42, 0.0 }
 0x31b   :  { %v1051_v44 = vpack.c.bf16 %v1050_v0, %v1049_v43 }
 0x31d   :  { %1059 = vmatpush.bf16.msrb.mxu3 %v1051_v44  ;;  %1171 = vmatmul.bf16.vlgmr.msra.gmra.mxu0 %v1051_v44 }
 0x320   :  { %1851 = vmatmul.msk.bf16.vlgmr.msrb.gmra.mxu3 %vm760_vm1, %v2792_v62 }
 0x321   :  { %1074 = vmatpush.bf16.msra.mxu3 %v1051_v44 }
 0x330   :  { %1852 = vmatmul.msk.bf16.vlgmr.msra.gmra.mxu3 %vm760_vm1, %v2794_v63 }
 0x39a   :  { %v1172_v5 = vpop.f32.mrf.mxu0 }
 0x3a2   :  { %v1174_v11 = vpop.f32.mrf.mxu0 }
 0x3a3   :  { %v1061_v60 = vpop.f32.mrf.mxu3 }
 0x3ab   :  { %v1063_v61 = vpop.f32.mrf.mxu3 }
 0x3ac   :  { %v1066_v62 = vpack.c.bf16 %v1063_v61, %v1061_v60 }
 0x3ae   :  { %1233 = vmatmul.bf16.vlgmr.msrb.gmra.mxu1 %v1066_v62 }
 0x3b3   :  { %v1076_v63 = vpop.f32.mrf.mxu3 }
 0x3bb   :  { %v1078_v2 = vpop.f32.mrf.mxu3 }
 0x3bc   :  { %v1081_v3 = vpack.c.bf16 %v1078_v2, %v1076_v63 }
 0x3be   :  { %1312 = vmatmul.bf16.vlgmr.msra.gmra.mxu2 %v1081_v3 }
 0x42b   :  { %v1234_v4 = vpop.f32.mrf.mxu1 }
 0x42c   :  { %v1235_v7 = vadd.f32 %v1234_v4, %v1172_v5 }
 0x433   :  { %v1236_v10 = vpop.f32.mrf.mxu1 }
 0x434   :  { %v1237_v12 = vadd.f32 %v1236_v10, %v1174_v11 }
 0x441   :  { %v1313_v6 = vpop.f32.mrf.mxu2 }
 0x442   :  { %v1318_v8 = vadd.f32 %v1313_v6, %v1235_v7 }
 0x444   :  { %v1324_v13 = vadd.f32 %v2146_v9, %v1318_v8 }
 0x446   :  { %v1326_v16 = vadd.f32 %v1324_v13, %v2783_v58  ;;  %v2122_v58 = vld [vmem:[#allocation11 + $0x10] sm:$0xff] }
 0x448   :  { %v1328_v19 = vmax.f32 %v1326_v16, 0.0 }
 0x449   :  { %v1315_v14 = vpop.f32.mrf.mxu2 }
 0x44a   :  { %v1319_v15 = vadd.f32 %v1315_v14, %v1237_v12 }
 0x44c   :  { %v1325_v17 = vadd.f32 %v2146_v9, %v1319_v15 }
 0x44e   :  { %v1327_v18 = vadd.f32 %v1325_v17, %v2785_v59  ;;  %v2121_v59 = vld [vmem:[#allocation11 + $0x8] sm:$0xff] }
 0x450   :  { %v1329_v20 = vmax.f32 %v1327_v18, 0.0 }
 0x452   :  { %v1331_v22 = vpack.c.bf16 %v1329_v20, %v1328_v19 }
 0x454   :  { %1342 = vmatpush.bf16.msrb.mxu3 %v1331_v22 }
 0x457   :  { %1981 = vmatmul.msk.bf16.vlgmr.msrb.gmra.mxu3 %vm760_vm1, %v1330_v23 }
 0x458   :  { %1413 = vmatpush.bf16.msra.mxu3 %v2127_v21 }
 0x45c   :  { %1414 = vmatpush.bf16.msra.mxu3 %v2126_v24 }
 0x460   :  { %1415 = vmatpush.bf16.msra.mxu3 %v2125_v25 }
 0x464   :  { %1416 = vmatpush.bf16.msra.mxu3 %v2124_v26 }
 0x468   :  { %1417 = vmatpush.bf16.msra.mxu3 %v2123_v27 }
 0x46c   :  { %1418 = vmatpush.bf16.msra.mxu3 %v2122_v58 }
 0x470   :  { %1419 = vmatpush.bf16.msra.mxu3 %v2121_v59 }
 0x474   :  { %1420 = vmatpush.bf16.msra.mxu3 %v2120_v28 }
 0x4da   :  { %v1344_v29 = vpop.f32.mrf.mxu3 }
 0x4db   :  { %v1348_v30 = vpack.c.bf16 %v1344_v29, %v1344_v29 }
 0x4dd   :  { %1421 = vmatmul.bf16.vlgmr.msra.gmra.mxu3 %v1348_v30 }
 0x4e2   :  { %v1346_v31 = vpop.f32.mrf.mxu3 }
 0x560   :  { %v1422_v32 = vpop.f32.mrf.mxu3 }
 0x561   :  { %1426 = vst [vmem:[#allocation13] sm:$0x3] %v1422_v32 }
 0x562   :  { %1437 = dma.vmem_to_hbm [thread:$0]  %s1433_s0, 32, %s1435_s6, [#allocation4]  }
 0x568   :  { %v1424_v33 = vpop.f32.mrf.mxu3 }
 0x569   :  { %2323 = dma.done.wait [#allocation4], 32  }
 0x56a   :  { %2324 = vsyncadd [#allocation4], 4294967264 }
 0x56b   :  { %1442 = vsyncpa [#allocation3], 1 }
 0x56c   :  { %1443 = vsyncpa [#allocation6], 1 }
 0x56d   :  { %1444 = vsyncpa [#allocation9], 1 }
 0x56e   :  { %1445 = vsyncpa [#allocation12], 1 }
 0x56f   :  { %1446 = vsyncpa [#allocation4], 1 }

</bundles_post_ra>
